<compile_context>
chip_gen: v7x
topology: tpu7x:2x2x1
jax: 0.10.0
libtpu: 0.0.40
codegen_flags: <defaults>
</compile_context>

<pallas_src>
import functools

import jax
import jax.numpy as jnp
from jax.experimental import pallas as pl
from jax.experimental.pallas import tpu as pltpu

LN_EPS = 1e-5  # nn.LayerNorm default


def _round_up(x, m):
    return (x + m - 1) // m * m


def _pad2(a, rows, cols):
    return jnp.pad(a, ((0, rows - a.shape[0]), (0, cols - a.shape[1])))


def _layernorm_fused(h, gamma, beta, true_dim):
    """LayerNorm over the last dim using one fused sum / sum-of-squares pass.

    `h` may have zero-padded trailing columns; they contribute 0 to both sums, and we
    divide by the true (unpadded) width so the statistics match nn.LayerNorm exactly.
    Padded gamma/beta are zero, so padded output columns stay exactly 0.
    """
    inv_n = 1.0 / float(true_dim)
    s = jnp.sum(h, axis=-1, keepdims=True)
    s2 = jnp.sum(h * h, axis=-1, keepdims=True)
    mean = s * inv_n
    var = jnp.maximum(s2 * inv_n - mean * mean, 0.0)  # guard tiny negative fp error
    return (h - mean) * jax.lax.rsqrt(var + LN_EPS) * gamma + beta


def actor_kernel(x_ref,
                 w1_ref, p1_ref,
                 w2_ref, p2_ref,
                 w3_ref, b3_ref,
                 o_ref,
                 *, fc1_dim, fc2_dim):
    x = x_ref[...]            # (TB, S) f32
    p1 = p1_ref[...]          # (3, F1) f32: rows = [bias, gamma, beta]
    p2 = p2_ref[...]          # (3, F2) f32

    # fc1 (bf16 MXU, f32 accumulate) -> LayerNorm -> ReLU (LN/act in f32)
    h = jnp.dot(x.astype(jnp.bfloat16), w1_ref[...],
                preferred_element_type=jnp.float32) + p1[0:1, :]
    h = _layernorm_fused(h, p1[1:2, :], p1[2:3, :], fc1_dim)
    h = jnp.maximum(h, 0.0)

    # fc2 -> LayerNorm -> ReLU
    h = jnp.dot(h.astype(jnp.bfloat16), w2_ref[...],
                preferred_element_type=jnp.float32) + p2[0:1, :]
    h = _layernorm_fused(h, p2[1:2, :], p2[2:3, :], fc2_dim)
    h = jnp.maximum(h, 0.0)

    # mu -> tanh   (lane-dense padded output; real columns sliced out in the wrapper)
    h = jnp.dot(h.astype(jnp.bfloat16), w3_ref[...],
                preferred_element_type=jnp.float32) + b3_ref[...]
    o_ref[...] = jnp.tanh(h)


def prepare_params(params):
    """One-time padding / packing / bf16 casting of parameters (hoisted out of the
    per-call path). Returns (prepped_arrays, static_dims)."""
    state_dim, fc1_dim = params["w1"].shape
    fc2_dim = params["w2"].shape[1]
    action_dim = params["w3"].shape[1]

    S = _round_up(state_dim, 8)      # contraction dim: sublane-aligned only (no 128 pad)
    F1 = _round_up(fc1_dim, 128)     # lane-dense hidden / output widths
    F2 = _round_up(fc2_dim, 128)
    A = _round_up(action_dim, 128)

    f32 = jnp.float32
    prepped = {
        # Matmul weights stored bf16 (MXU native rate, half the DMA bytes).
        "w1": _pad2(params["w1"].astype(f32), S, F1).astype(jnp.bfloat16),
        "w2": _pad2(params["w2"].astype(f32), F1, F2).astype(jnp.bfloat16),
        "w3": _pad2(params["w3"].astype(f32), F2, A).astype(jnp.bfloat16),
        # Per-layer [bias; gamma; beta] packed into one (3, F) f32 array.
        "p1": jnp.concatenate([_pad2(params["b1"].astype(f32), 1, F1),
                               _pad2(params["g1"].astype(f32), 1, F1),
                               _pad2(params["be1"].astype(f32), 1, F1)], axis=0),
        "p2": jnp.concatenate([_pad2(params["b2"].astype(f32), 1, F2),
                               _pad2(params["g2"].astype(f32), 1, F2),
                               _pad2(params["be2"].astype(f32), 1, F2)], axis=0),
        "b3": _pad2(params["b3"].astype(f32), 1, A),
    }
    dims = {"state_dim": state_dim, "fc1_dim": fc1_dim, "fc2_dim": fc2_dim,
            "action_dim": action_dim, "S": S, "F1": F1, "F2": F2, "A": A}
    return prepped, dims


def actor_forward(state, prepped, dims, *, tb=512):
    """state: (B, state_dim) f32; prepped/dims from prepare_params()."""
    B = state.shape[0]
    S, F1, F2, A = dims["S"], dims["F1"], dims["F2"], dims["A"]

    # Batch tiling: TB rows per grid step (multiple of 8), pad batch to a whole grid.
    B8 = _round_up(B, 8)
    TB = min(tb, B8)
    if B8 >= 16:
        # Keep >= 2 grid steps so the "parallel" batch axis shards across v7x's two
        # TensorCores (no-op on single-TC v5e/v6e).
        TB = min(TB, max(8, _round_up(B8 // 2, 8)))
    Bp = _round_up(B8, TB)
    grid = (Bp // TB,)

    # Only the per-call state needs padding (batch rows + sublane alignment of S).
    x = _pad2(state.astype(jnp.float32), Bp, S)

    in_specs = [
        pl.BlockSpec((TB, S), lambda i: (i, 0)),     # state stream (per-step DMA)
        pl.BlockSpec((S, F1), lambda i: (0, 0)),     # w1 (bf16, VMEM-resident)
        pl.BlockSpec((3, F1), lambda i: (0, 0)),     # [b1; g1; be1]
        pl.BlockSpec((F1, F2), lambda i: (0, 0)),    # w2
        pl.BlockSpec((3, F2), lambda i: (0, 0)),     # [b2; g2; be2]
        pl.BlockSpec((F2, A), lambda i: (0, 0)),     # w3
        pl.BlockSpec((1, A), lambda i: (0, 0)),      # b3
    ]
    out_specs = pl.BlockSpec((TB, A), lambda i: (i, 0))

    operands = (x, prepped["w1"], prepped["p1"], prepped["w2"], prepped["p2"],
                prepped["w3"], prepped["b3"])

    flops = 2 * Bp * (S * F1 + F1 * F2 + F2 * A)
    transcendentals = Bp * (A + 2)  # tanh per padded output column + 2 rsqrt per row
    bytes_accessed = (sum(int(a.size) * a.dtype.itemsize for a in operands)
                      + 4 * Bp * A)

    kernel = functools.partial(actor_kernel,
                               fc1_dim=dims["fc1_dim"], fc2_dim=dims["fc2_dim"])

    out_padded = pl.pallas_call(
        kernel,
        out_shape=jax.ShapeDtypeStruct((Bp, A), jnp.float32),
        grid=grid,
        in_specs=in_specs,
        out_specs=out_specs,
        compiler_params=pltpu.CompilerParams(
            dimension_semantics=("parallel",),
            vmem_limit_bytes=32 * 1024 * 1024),
        cost_estimate=pl.CostEstimate(
            flops=flops,
            transcendentals=transcendentals,
            bytes_accessed=bytes_accessed),
    )(*operands)

    return out_padded[:B, :dims["action_dim"]]


def init_params(key, state_dim, action_dim, fc1_dim, fc2_dim):
    """Deterministic init mirroring the PyTorch __init__ (uniform ranges)."""
    ks = jax.random.split(key, 6)
    f1 = 1.0 / jnp.sqrt(fc1_dim)   # fc1.weight.size()[0] == fc1_dim
    f2 = 1.0 / jnp.sqrt(fc2_dim)   # fc2.weight.size()[0] == fc2_dim
    f3 = 0.003
    params = {
        # Linear weights stored (in, out) so kernel does x @ W + b.
        "w1": jax.random.uniform(ks[0], (state_dim, fc1_dim), jnp.float32, -f1, f1),
        "b1": jax.random.uniform(ks[1], (1, fc1_dim), jnp.float32, -f1, f1),
        "w2": jax.random.uniform(ks[2], (fc1_dim, fc2_dim), jnp.float32, -f2, f2),
        "b2": jax.random.uniform(ks[3], (1, fc2_dim), jnp.float32, -f2, f2),
        "w3": jax.random.uniform(ks[4], (fc2_dim, action_dim), jnp.float32, -f3, f3),
        "b3": jax.random.uniform(ks[5], (1, action_dim), jnp.float32, -f3, f3),
        # LayerNorm affine params (PyTorch default init: weight=1, bias=0).
        "g1": jnp.ones((1, fc1_dim), jnp.float32),
        "be1": jnp.zeros((1, fc1_dim), jnp.float32),
        "g2": jnp.ones((1, fc2_dim), jnp.float32),
        "be2": jnp.zeros((1, fc2_dim), jnp.float32),
    }
    return params


def _layernorm_ref(h, gamma, beta):
    mean = jnp.mean(h, axis=-1, keepdims=True)
    var = jnp.mean((h - mean) * (h - mean), axis=-1, keepdims=True)
    return (h - mean) * jax.lax.rsqrt(var + LN_EPS) * gamma + beta


def _reference_forward(state, p):
    """Pure-JAX f32 reference (two-pass LayerNorm, matches nn.LayerNorm)."""
    h = state @ p["w1"] + p["b1"]
    h = _layernorm_ref(h, p["g1"], p["be1"])
    h = jnp.maximum(h, 0.0)
    h = h @ p["w2"] + p["b2"]
    h = _layernorm_ref(h, p["g2"], p["be2"])
    h = jnp.maximum(h, 0.0)
    h = h @ p["w3"] + p["b3"]
    return jnp.tanh(h)


if __name__ == "__main__":
    key = jax.random.PRNGKey(0)
    k_state, k_params = jax.random.split(key)

    batch, state_dim, action_dim, fc1_dim, fc2_dim = 2, 8, 4, 32, 32
    state = jax.random.normal(k_state, (batch, state_dim), jnp.float32)
    params = init_params(k_params, state_dim, action_dim, fc1_dim, fc2_dim)

    # Pad / pack / cast parameters ONCE (hoisted out of the per-call path).
    prepped, dims = prepare_params(params)
    prepped = jax.tree_util.tree_map(jax.block_until_ready, prepped)

    out = actor_forward(state, prepped, dims)
    out = jax.block_until_ready(out)

    ref = _reference_forward(state, params)
    assert out.shape == (batch, action_dim)
    # bf16 MXU operands (f32 accumulation) -> slightly looser tolerance vs. f32 ref.
    assert jnp.allclose(out, ref, atol=2e-2, rtol=2e-2), "mismatch vs. reference"
    print("KERNEL_OK")
</pallas_src>

<mosaic_0001>
module attributes {stable_mosaic.version = 11 : i64} {
  func.func @actor_kernel(%arg0: i32, %arg1: memref<8x8xf32, #tpu.memory_space<vmem>>, %arg2: memref<8x128xbf16, #tpu.memory_space<vmem>>, %arg3: memref<3x128xf32, #tpu.memory_space<vmem>>, %arg4: memref<128x128xbf16, #tpu.memory_space<vmem>>, %arg5: memref<3x128xf32, #tpu.memory_space<vmem>>, %arg6: memref<128x128xbf16, #tpu.memory_space<vmem>>, %arg7: memref<1x128xf32, #tpu.memory_space<vmem>>, %arg8: memref<8x128xf32, #tpu.memory_space<vmem>>) attributes {dimension_semantics = [#tpu.dimension_semantics<parallel>], iteration_bounds = array<i64: 1>, scalar_prefetch = 0 : i64, scratch_operands = 0 : i64, tpu.core_type = #tpu.core_type<tc>, window_params = [{transform_indices = @transform_0, window_bounds = array<i64: 8, 8>}, {pipeline_mode = #tpu.pipeline_mode<synchronous>, transform_indices = @transform_1, window_bounds = array<i64: 8, 128>}, {pipeline_mode = #tpu.pipeline_mode<synchronous>, transform_indices = @transform_2, window_bounds = array<i64: 3, 128>}, {pipeline_mode = #tpu.pipeline_mode<synchronous>, transform_indices = @transform_3, window_bounds = array<i64: 128, 128>}, {pipeline_mode = #tpu.pipeline_mode<synchronous>, transform_indices = @transform_4, window_bounds = array<i64: 3, 128>}, {pipeline_mode = #tpu.pipeline_mode<synchronous>, transform_indices = @transform_5, window_bounds = array<i64: 128, 128>}, {pipeline_mode = #tpu.pipeline_mode<synchronous>, transform_indices = @transform_6, window_bounds = array<i64: 1, 128>}, {transform_indices = @transform_7, window_bounds = array<i64: 8, 128>}]} {
    %c0 = arith.constant 0 : index
    %c0_0 = arith.constant 0 : index
    %0 = vector.load %arg1[%c0, %c0_0] : memref<8x8xf32, #tpu.memory_space<vmem>>, vector<8x8xf32>
    %c0_1 = arith.constant 0 : index
    %c0_2 = arith.constant 0 : index
    %1 = vector.load %arg3[%c0_1, %c0_2] : memref<3x128xf32, #tpu.memory_space<vmem>>, vector<3x128xf32>
    %c0_3 = arith.constant 0 : index
    %c0_4 = arith.constant 0 : index
    %2 = vector.load %arg5[%c0_3, %c0_4] : memref<3x128xf32, #tpu.memory_space<vmem>>, vector<3x128xf32>
    %3 = arith.truncf %0 : vector<8x8xf32> to vector<8x8xbf16>
    %c0_5 = arith.constant 0 : index
    %c0_6 = arith.constant 0 : index
    %4 = vector.load %arg2[%c0_5, %c0_6] : memref<8x128xbf16, #tpu.memory_space<vmem>>, vector<8x128xbf16>
    %cst = arith.constant dense<0.000000e+00> : vector<8x128xf32>
    %5 = tpu.matmul %3, %4, %cst {dimension_numbers = #tpu.dot_dimension_numbers<[1], [0], [0], [1], [0, 0, 1, 1], [], []>} : vector<8x8xbf16>, vector<8x128xbf16>, vector<8x128xf32> -> vector<8x128xf32>
    %6 = vector.extract_strided_slice %1 {offsets = [0, 0], sizes = [1, 128], strides = [1, 1]} : vector<3x128xf32> to vector<1x128xf32>
    %7 = vector.broadcast %6 : vector<1x128xf32> to vector<8x128xf32>
    %8 = arith.addf %5, %7 : vector<8x128xf32>
    %9 = vector.extract_strided_slice %1 {offsets = [1, 0], sizes = [1, 128], strides = [1, 1]} : vector<3x128xf32> to vector<1x128xf32>
    %10 = vector.extract_strided_slice %1 {offsets = [2, 0], sizes = [1, 128], strides = [1, 1]} : vector<3x128xf32> to vector<1x128xf32>
    %cst_7 = arith.constant dense<0.000000e+00> : vector<8xf32>
    %11 = vector.multi_reduction <add>, %8, %cst_7 [1] : vector<8x128xf32> to vector<8xf32>
    %12 = vector.shape_cast %11 : vector<8xf32> to vector<8x1xf32>
    %13 = arith.mulf %8, %8 : vector<8x128xf32>
    %cst_8 = arith.constant dense<0.000000e+00> : vector<8xf32>
    %14 = vector.multi_reduction <add>, %13, %cst_8 [1] : vector<8x128xf32> to vector<8xf32>
    %15 = vector.shape_cast %14 : vector<8xf32> to vector<8x1xf32>
    %cst_9 = arith.constant 3.125000e-02 : f32
    %16 = vector.broadcast %cst_9 : f32 to vector<8x1xf32>
    %17 = arith.mulf %12, %16 : vector<8x1xf32>
    %cst_10 = arith.constant 3.125000e-02 : f32
    %18 = vector.broadcast %cst_10 : f32 to vector<8x1xf32>
    %19 = arith.mulf %15, %18 : vector<8x1xf32>
    %20 = arith.mulf %17, %17 : vector<8x1xf32>
    %21 = arith.subf %19, %20 : vector<8x1xf32>
    %cst_11 = arith.constant 0.000000e+00 : f32
    %22 = vector.broadcast %cst_11 : f32 to vector<8x1xf32>
    %23 = arith.maximumf %21, %22 : vector<8x1xf32>
    %24 = vector.broadcast %17 : vector<8x1xf32> to vector<8x128xf32>
    %25 = arith.subf %8, %24 : vector<8x128xf32>
    %cst_12 = arith.constant 9.99999974E-6 : f32
    %26 = vector.broadcast %cst_12 : f32 to vector<8x1xf32>
    %27 = arith.addf %23, %26 : vector<8x1xf32>
    %28 = math.rsqrt %27 : vector<8x1xf32>
    %29 = vector.broadcast %28 : vector<8x1xf32> to vector<8x128xf32>
    %30 = arith.mulf %25, %29 : vector<8x128xf32>
    %31 = vector.broadcast %9 : vector<1x128xf32> to vector<8x128xf32>
    %32 = arith.mulf %30, %31 : vector<8x128xf32>
    %33 = vector.broadcast %10 : vector<1x128xf32> to vector<8x128xf32>
    %34 = arith.addf %32, %33 : vector<8x128xf32>
    %cst_13 = arith.constant 0.000000e+00 : f32
    %35 = vector.broadcast %cst_13 : f32 to vector<8x128xf32>
    %36 = arith.maximumf %34, %35 : vector<8x128xf32>
    %37 = arith.truncf %36 : vector<8x128xf32> to vector<8x128xbf16>
    %c0_14 = arith.constant 0 : index
    %c0_15 = arith.constant 0 : index
    %38 = vector.load %arg4[%c0_14, %c0_15] : memref<128x128xbf16, #tpu.memory_space<vmem>>, vector<128x128xbf16>
    %cst_16 = arith.constant dense<0.000000e+00> : vector<8x128xf32>
    %39 = tpu.matmul %37, %38, %cst_16 {dimension_numbers = #tpu.dot_dimension_numbers<[1], [0], [0], [1], [0, 0, 1, 1], [], []>} : vector<8x128xbf16>, vector<128x128xbf16>, vector<8x128xf32> -> vector<8x128xf32>
    %40 = vector.extract_strided_slice %2 {offsets = [0, 0], sizes = [1, 128], strides = [1, 1]} : vector<3x128xf32> to vector<1x128xf32>
    %41 = vector.broadcast %40 : vector<1x128xf32> to vector<8x128xf32>
    %42 = arith.addf %39, %41 : vector<8x128xf32>
    %43 = vector.extract_strided_slice %2 {offsets = [1, 0], sizes = [1, 128], strides = [1, 1]} : vector<3x128xf32> to vector<1x128xf32>
    %44 = vector.extract_strided_slice %2 {offsets = [2, 0], sizes = [1, 128], strides = [1, 1]} : vector<3x128xf32> to vector<1x128xf32>
    %cst_17 = arith.constant dense<0.000000e+00> : vector<8xf32>
    %45 = vector.multi_reduction <add>, %42, %cst_17 [1] : vector<8x128xf32> to vector<8xf32>
    %46 = vector.shape_cast %45 : vector<8xf32> to vector<8x1xf32>
    %47 = arith.mulf %42, %42 : vector<8x128xf32>
    %cst_18 = arith.constant dense<0.000000e+00> : vector<8xf32>
    %48 = vector.multi_reduction <add>, %47, %cst_18 [1] : vector<8x128xf32> to vector<8xf32>
    %49 = vector.shape_cast %48 : vector<8xf32> to vector<8x1xf32>
    %cst_19 = arith.constant 3.125000e-02 : f32
    %50 = vector.broadcast %cst_19 : f32 to vector<8x1xf32>
    %51 = arith.mulf %46, %50 : vector<8x1xf32>
    %cst_20 = arith.constant 3.125000e-02 : f32
    %52 = vector.broadcast %cst_20 : f32 to vector<8x1xf32>
    %53 = arith.mulf %49, %52 : vector<8x1xf32>
    %54 = arith.mulf %51, %51 : vector<8x1xf32>
    %55 = arith.subf %53, %54 : vector<8x1xf32>
    %cst_21 = arith.constant 0.000000e+00 : f32
    %56 = vector.broadcast %cst_21 : f32 to vector<8x1xf32>
    %57 = arith.maximumf %55, %56 : vector<8x1xf32>
    %58 = vector.broadcast %51 : vector<8x1xf32> to vector<8x128xf32>
    %59 = arith.subf %42, %58 : vector<8x128xf32>
    %cst_22 = arith.constant 9.99999974E-6 : f32
    %60 = vector.broadcast %cst_22 : f32 to vector<8x1xf32>
    %61 = arith.addf %57, %60 : vector<8x1xf32>
    %62 = math.rsqrt %61 : vector<8x1xf32>
    %63 = vector.broadcast %62 : vector<8x1xf32> to vector<8x128xf32>
    %64 = arith.mulf %59, %63 : vector<8x128xf32>
    %65 = vector.broadcast %43 : vector<1x128xf32> to vector<8x128xf32>
    %66 = arith.mulf %64, %65 : vector<8x128xf32>
    %67 = vector.broadcast %44 : vector<1x128xf32> to vector<8x128xf32>
    %68 = arith.addf %66, %67 : vector<8x128xf32>
    %cst_23 = arith.constant 0.000000e+00 : f32
    %69 = vector.broadcast %cst_23 : f32 to vector<8x128xf32>
    %70 = arith.maximumf %68, %69 : vector<8x128xf32>
    %71 = arith.truncf %70 : vector<8x128xf32> to vector<8x128xbf16>
    %c0_24 = arith.constant 0 : index
    %c0_25 = arith.constant 0 : index
    %72 = vector.load %arg6[%c0_24, %c0_25] : memref<128x128xbf16, #tpu.memory_space<vmem>>, vector<128x128xbf16>
    %cst_26 = arith.constant dense<0.000000e+00> : vector<8x128xf32>
    %73 = tpu.matmul %71, %72, %cst_26 {dimension_numbers = #tpu.dot_dimension_numbers<[1], [0], [0], [1], [0, 0, 1, 1], [], []>} : vector<8x128xbf16>, vector<128x128xbf16>, vector<8x128xf32> -> vector<8x128xf32>
    %c0_27 = arith.constant 0 : index
    %c0_28 = arith.constant 0 : index
    %74 = vector.load %arg7[%c0_27, %c0_28] : memref<1x128xf32, #tpu.memory_space<vmem>>, vector<1x128xf32>
    %75 = vector.broadcast %74 : vector<1x128xf32> to vector<8x128xf32>
    %76 = arith.addf %73, %75 : vector<8x128xf32>
    %77 = math.tanh %76 : vector<8x128xf32>
    %c0_29 = arith.constant 0 : index
    %c0_30 = arith.constant 0 : index
    %78 = vector.load %arg8[%c0_29, %c0_30] : memref<8x128xf32, #tpu.memory_space<vmem>>, vector<8x128xf32>
    tpu.vector_store %arg8[%c0_29, %c0_30], %77 {strides = array<i32>} : memref<8x128xf32, #tpu.memory_space<vmem>>, vector<8x128xf32>,
    return
  }
  func.func @transform_0(%arg0: i32) -> (i32, i32) {
    %c0_i32 = arith.constant 0 : i32
    %c0_i32_0 = arith.constant 0 : i32
    return %arg0, %c0_i32 : i32, i32
  }
  func.func @transform_1(%arg0: i32) -> (i32, i32) {
    %c0_i32 = arith.constant 0 : i32
    %c0_i32_0 = arith.constant 0 : i32
    %c0_i32_1 = arith.constant 0 : i32
    return %c0_i32, %c0_i32_0 : i32, i32
  }
  func.func @transform_2(%arg0: i32) -> (i32, i32) {
    %c0_i32 = arith.constant 0 : i32
    %c0_i32_0 = arith.constant 0 : i32
    %c0_i32_1 = arith.constant 0 : i32
    return %c0_i32, %c0_i32_0 : i32, i32
  }
  func.func @transform_3(%arg0: i32) -> (i32, i32) {
    %c0_i32 = arith.constant 0 : i32
    %c0_i32_0 = arith.constant 0 : i32
    %c0_i32_1 = arith.constant 0 : i32
    return %c0_i32, %c0_i32_0 : i32, i32
  }
  func.func @transform_4(%arg0: i32) -> (i32, i32) {
    %c0_i32 = arith.constant 0 : i32
    %c0_i32_0 = arith.constant 0 : i32
    %c0_i32_1 = arith.constant 0 : i32
    return %c0_i32, %c0_i32_0 : i32, i32
  }
  func.func @transform_5(%arg0: i32) -> (i32, i32) {
    %c0_i32 = arith.constant 0 : i32
    %c0_i32_0 = arith.constant 0 : i32
    %c0_i32_1 = arith.constant 0 : i32
    return %c0_i32, %c0_i32_0 : i32, i32
  }
  func.func @transform_6(%arg0: i32) -> (i32, i32) {
    %c0_i32 = arith.constant 0 : i32
    %c0_i32_0 = arith.constant 0 : i32
    %c0_i32_1 = arith.constant 0 : i32
    return %c0_i32, %c0_i32_0 : i32, i32
  }
  func.func @transform_7(%arg0: i32) -> (i32, i32) {
    %c0_i32 = arith.constant 0 : i32
    %c0_i32_0 = arith.constant 0 : i32
    return %arg0, %c0_i32 : i32, i32
  }
}

</mosaic_0001>

<bundles_post_ra>
// kernel: tpu_custom_call.1
= control target key start
LH: loop header
LB: loop body
LE: loop exit
PB: predicated region body
PF: predicated region fallthrough
CT: control target
= control target key end

     0   :  { %12 = vsyncpa [#allocation3], 0  ;;  %s802_s0 = inlined_call_operand.hbm [shape: f32[8,8], index: 0, kind: input, shape index: {}]   ;;  %s803_s1 = inlined_call_operand.hbm [shape: bf16[8,128], index: 1, kind: input, shape index: {}]   ;;  %s804_s2 = inlined_call_operand.vmem [shape: f32[3,128], index: 2, kind: input, shape index: {}]   ;;  %s805_s3 = inlined_call_operand.hbm [shape: bf16[128,128], index: 3, kind: input, shape index: {}]   ;;  %s806_s4 = inlined_call_operand.vmem [shape: f32[3,128], index: 4, kind: input, shape index: {}]   ;;  %s807_s5 = inlined_call_operand.hbm [shape: bf16[128,128], index: 5, kind: input, shape index: {}]   ;;  %s808_s6 = inlined_call_operand.vmem [shape: f32[1,128], index: 6, kind: input, shape index: {}]   ;;  %s809_s7 = inlined_call_operand.hbm [shape: f32[8,128], index: 7, kind: output, shape index: {}]  }
   0x1   :  { %13 = vsyncpa [#allocation6], 0 }
   0x2   :  { %14 = vsyncpa [#allocation9], 0 }
   0x3   :  { %15 = vsyncpa [#allocation4], 0  ;;  %s659_s24 = smov [#allocation5]   ;;  %s660_s26 = smov [#allocation2]  }
   0x4   :  { %s32_s25 = sshll.u32 %s659_s24, 4  ;;  %s22_s27 = sshll.u32 %s660_s26, 4  ;;  %s33_s25 = int_to_ptr.vmem [resolvable:$true] %s32_s25  ;;  %s23_s27 = int_to_ptr.vmem [resolvable:$true] %s22_s27 }
   0x5   :  { %s541_s30 = scalar_lea.hbm %s803_s1, 64 }
   0x6   :  { %p542_p0 = scmp.ne.s32.totalorder %s803_s1, %s541_s30  ;;  %p545_p1 = scmp.lt.u32.totalorder %s541_s30, %s803_s1 }
   0x8   :  { %p547_p2 = pnand %p545_p1, %p542_p0 }
   0xa   :  { %550 = shalt.err (!%p547_p2)
}
   0xb   :  { %s551_s12 = scalar_lea.vmem %s33_s25, 64  ;;  %p556_p4 = scmp.lt.s32.totalorder %s33_s25, %s33_s25 }
   0xc   :  { %p552_p3 = scmp.ne.s32.totalorder %s33_s25, %s551_s12  ;;  %p557_p5 = scmp.lt.s32.totalorder %s551_s12, %s551_s12 }
   0xe   :  { %p558_p6 = por %p557_p5, %p556_p4 }
  0x10   :  { %p559_p7 = pnand %p558_p6, %p552_p3 }
  0x12   :  { %562 = shalt.err (!%p559_p7)
}
  0x13   :  { %35 = dma.hbm_to_vmem [thread:$0]  %s803_s1, 64, %s33_s25, [#allocation6]  }
  0x14   :  { %s563_s17 = scalar_lea.hbm %s802_s0, 128 }
  0x15   :  { %p564_p8 = scmp.ne.s32.totalorder %s802_s0, %s563_s17  ;;  %p567_p9 = scmp.lt.u32.totalorder %s563_s17, %s802_s0 }
  0x17   :  { %p569_p10 = pnand %p567_p9, %p564_p8 }
  0x19   :  { %572 = shalt.err (!%p569_p10)
}
  0x1a   :  { %s573_s22 = scalar_lea.vmem %s23_s27, 128  ;;  %p578_p12 = scmp.lt.s32.totalorder %s23_s27, %s23_s27 }
  0x1b   :  { %p574_p11 = scmp.ne.s32.totalorder %s23_s27, %s573_s22  ;;  %p579_p13 = scmp.lt.s32.totalorder %s573_s22, %s573_s22 }
  0x1d   :  { %p580_p0 = por %p579_p13, %p578_p12 }
  0x1f   :  { %p581_p1 = pnand %p580_p0, %p574_p11 }
  0x21   :  { %584 = shalt.err (!%p581_p1)
}
  0x22   :  { %25 = dma.hbm_to_vmem [thread:$0]  %s802_s0, 128, %s23_s27, [#allocation3]  }
  0x23   :  { %s661_s24 = smov [#allocation7]   ;;  %s585_s29 = scalar_lea.hbm %s805_s3, 1024 }
  0x24   :  { %s43_s25 = sshll.u32 %s661_s24, 4  ;;  %p586_p2 = scmp.ne.s32.totalorder %s805_s3, %s585_s29  ;;  %s44_s25 = int_to_ptr.vmem [resolvable:$true] %s43_s25 }
  0x25   :  { %p589_p3 = scmp.lt.u32.totalorder %s585_s29, %s805_s3 }
  0x27   :  { %p591_p4 = pnand %p589_p3, %p586_p2 }
  0x29   :  { %594 = shalt.err (!%p591_p4)
}
  0x2a   :  { %s595_s11 = scalar_lea.vmem %s44_s25, 1024  ;;  %p600_p6 = scmp.lt.s32.totalorder %s44_s25, %s44_s25 }
  0x2b   :  { %p596_p5 = scmp.ne.s32.totalorder %s44_s25, %s595_s11  ;;  %p601_p7 = scmp.lt.s32.totalorder %s595_s11, %s595_s11 }
  0x2d   :  { %p602_p8 = por %p601_p7, %p600_p6 }
  0x2f   :  { %p603_p9 = pnand %p602_p8, %p596_p5 }
  0x31   :  { %606 = shalt.err (!%p603_p9)
}
  0x32   :  { %s662_s0 = smov 64   ;;  %s663_s27 = smov 4  }
  0x33   :  { %49 = dma.hbm_to_vmem [thread:$0]  %s805_s3, 1024, %s44_s25, [#allocation6], %s662_s0, %s662_s0, %s663_s27  }
  0x34   :  { %s664_s14 = smov [#allocation8]   ;;  %s607_s18 = scalar_lea.hbm %s807_s5, 1024 }
  0x35   :  { %s57_s15 = sshll.u32 %s664_s14, 4  ;;  %p608_p10 = scmp.ne.s32.totalorder %s807_s5, %s607_s18  ;;  %s58_s15 = int_to_ptr.vmem [resolvable:$true] %s57_s15 }
  0x36   :  { %p611_p11 = scmp.lt.u32.totalorder %s607_s18, %s807_s5 }
  0x38   :  { %p613_p12 = pnand %p611_p11, %p608_p10 }
  0x3a   :  { %616 = shalt.err (!%p613_p12)
}
  0x3b   :  { %s617_s1 = scalar_lea.vmem %s58_s15, 1024  ;;  %p622_p0 = scmp.lt.s32.totalorder %s58_s15, %s58_s15 }
  0x3c   :  { %p618_p13 = scmp.ne.s32.totalorder %s58_s15, %s617_s1  ;;  %p623_p1 = scmp.lt.s32.totalorder %s617_s1, %s617_s1 }
  0x3e   :  { %p624_p2 = por %p623_p1, %p622_p0 }
  0x40   :  { %p625_p3 = pnand %p624_p2, %p618_p13 }
  0x42   :  { %628 = shalt.err (!%p625_p3)
}
  0x43   :  { %63 = dma.hbm_to_vmem [thread:$0]  %s807_s5, 1024, %s58_s15, [#allocation9], %s662_s0, %s662_s0, %s663_s27  }
  0x44   :  { %651 = dma.done.wait [#allocation3], 128  }
  0x45   :  { %652 = vsyncadd [#allocation3], 4294967168 }
  0x46   :  { %653 = dma.done.wait [#allocation6], 1088  }
  0x47   :  { %654 = vsyncadd [#allocation6], 4294966208 }
  0x48   :  { %655 = dma.done.wait [#allocation9], 1024  }
  0x49   :  { %656 = vsyncadd [#allocation9], 4294966272  ;;  %v665_v0 = vmov 0.0   ;;  %vm666_vm0 = vmmov 0   ;;  %vm92_vm1 = vcmask 1043456   ;;  %v79_v2 = vld [vmem:[#allocation2] sm:$0xff]  ;;  %v84_v5 = vlaneseq }
  0x4a   :  { %464 = vmatprep.subr.bf16.mxu0 %v665_v0  ;;  %466 = vmatprep.mubr.msk.bf16.mxu0 %vm666_vm0, %v665_v0  ;;  %v83_v1 = vld [vmem:[#allocation5] sm:$0xf]  ;;  %v82_v4 = vpack.c.bf16 %v79_v2, %v79_v2  ;;  %vm88_vm2 = vcmask 64512   ;;  %v80_v8 = vld [vmem:[%s804_s2] sm:$0x7]  ;;  %v519_v16 = vld [vmem:[#allocation7] sm:$0xff]  }
  0x4b   :  { %470 = vmatprep.subr.bf16.mxu1 %v665_v0  ;;  %486 = vmatprep.mubr.msk.bf16.mxu1 %vm666_vm0, %v665_v0  ;;  %v94_v3 = vsel %vm92_vm1, %v83_v1, 0  ;;  %v762_v6 = vshrl.u32 %v84_v5, 7  ;;  %v520_v17 = vld [vmem:[#allocation7 + $0x8] sm:$0xff]   ;;  %v521_v18 = vld [vmem:[#allocation7 + $0x10] sm:$0xff]   ;;  %v522_v19 = vld [vmem:[#allocation7 + $0x18] sm:$0xff]   ;;  %s667_s28 = smov [#allocation10]  }
  0x4c   :  { %465 = vmatpush3.bf16.msra.mxu0 %v94_v3  ;;  %471 = vmatpush3.bf16.msra.mxu1 %v519_v16  ;;  %v523_v20 = vld [vmem:[#allocation7 + $0x20] sm:$0xff]   ;;  %v524_v21 = vld [vmem:[#allocation7 + $0x28] sm:$0xff]   ;;  %v525_v22 = vld [vmem:[#allocation7 + $0x30] sm:$0xff]   ;;  %s415_s29 = sshll.u32 %s667_s28, 4  ;;  %s416_s29 = int_to_ptr.vmem [resolvable:$true] %s415_s29 }
  0x4d   :  { %490 = vmatprep.subr.bf16.mxu0 %v665_v0  ;;  %v86_v7 = vsub.s32 0, %v762_v6  ;;  %472 = vmatprep.subr.bf16.mxu1 %v665_v0  ;;  %v526_v23 = vld [vmem:[#allocation7 + $0x38] sm:$0xff]   ;;  %v152_v32 = vsub.s32 1, %v762_v6  ;;  %v157_v33 = vsub.s32 2, %v762_v6  ;;  %v81_v43 = vld [vmem:[%s806_s4] sm:$0x7]  ;;  %p634_p5 = scmp.lt.s32.totalorder %s416_s29, %s416_s29 }
  0x4e   :  { %v527_v51 = vld [vmem:[#allocation8] sm:$0xff]   ;;  %v528_v52 = vld [vmem:[#allocation8 + $0x8] sm:$0xff]   ;;  %v529_v53 = vld [vmem:[#allocation8 + $0x10] sm:$0xff]   ;;  %s629_s30 = scalar_lea.vmem %s416_s29, 128 }
  0x4f   :  { %467 = vmatmul.mubr.msk.bf16.vlgmr.msra.gmra.mrb[0].mxu0 %vm88_vm2, %v82_v4  ;;  %v87_v9 = vrot.slane %v80_v8, %v86_v7  ;;  %v153_v34 = vrot.slane %v80_v8, %v152_v32  ;;  %v158_v38 = vrot.slane %v80_v8, %v157_v33  ;;  %v181_v44 = vrot.slane %v81_v43, %v86_v7  ;;  %v530_v54 = vld [vmem:[#allocation8 + $0x18] sm:$0xff]   ;;  %v531_v55 = vld [vmem:[#allocation8 + $0x20] sm:$0xff]   ;;  %v532_v56 = vld [vmem:[#allocation8 + $0x28] sm:$0xff]   ;;  %p630_p4 = scmp.ne.s32.totalorder %s416_s29, %s629_s30  ;;  %p635_p6 = scmp.lt.s32.totalorder %s629_s30, %s629_s30 }
  0x50   :  { %506 = vmatprep.mubr.msk.bf16.mxu0 %vm666_vm0, %v665_v0  ;;  %473 = vmatpush3.bf16.msra.mxu1 %v520_v17  ;;  %v533_v57 = vld [vmem:[#allocation8 + $0x30] sm:$0xff]   ;;  %v534_v58 = vld [vmem:[#allocation8 + $0x38] sm:$0xff]   ;;  %v287_v4 = vrot.slane %v81_v43, %v152_v32  ;;  %v292_v7 = vrot.slane %v81_v43, %v157_v33 }
  0x51   :  { %474 = vmatprep.subr.bf16.mxu1 %v665_v0  ;;  %491 = vmatpush3.bf16.msra.mxu0 %v527_v51  ;;  %p636_p7 = por %p635_p6, %p634_p5 }
  0x52   :  { %492 = vmatprep.subr.bf16.mxu0 %v665_v0 }
  0x53   :  { %p637_p8 = pnand %p636_p7, %p630_p4 }
  0x54   :  { %475 = vmatpush3.bf16.msra.mxu1 %v521_v18 }
  0x55   :  { %476 = vmatprep.subr.bf16.mxu1 %v665_v0  ;;  %493 = vmatpush3.bf16.msra.mxu0 %v528_v52 }
  0x56   :  { %494 = vmatprep.subr.bf16.mxu0 %v665_v0 }
  0x58   :  { %477 = vmatpush3.bf16.msra.mxu1 %v522_v19 }
  0x59   :  { %478 = vmatprep.subr.bf16.mxu1 %v665_v0  ;;  %495 = vmatpush3.bf16.msra.mxu0 %v529_v53 }
  0x5a   :  { %496 = vmatprep.subr.bf16.mxu0 %v665_v0 }
  0x5c   :  { %479 = vmatpush3.bf16.msra.mxu1 %v523_v20 }
  0x5d   :  { %480 = vmatprep.subr.bf16.mxu1 %v665_v0  ;;  %497 = vmatpush3.bf16.msra.mxu0 %v530_v54 }
  0x5e   :  { %498 = vmatprep.subr.bf16.mxu0 %v665_v0 }
  0x60   :  { %481 = vmatpush3.bf16.msra.mxu1 %v524_v21 }
  0x61   :  { %482 = vmatprep.subr.bf16.mxu1 %v665_v0  ;;  %499 = vmatpush3.bf16.msra.mxu0 %v531_v55 }
  0x62   :  { %500 = vmatprep.subr.bf16.mxu0 %v665_v0 }
  0x64   :  { %483 = vmatpush3.bf16.msra.mxu1 %v525_v22 }
  0x65   :  { %484 = vmatprep.subr.bf16.mxu1 %v665_v0  ;;  %501 = vmatpush3.bf16.msra.mxu0 %v532_v56 }
  0x66   :  { %502 = vmatprep.subr.bf16.mxu0 %v665_v0 }
  0x68   :  { %485 = vmatpush3.bf16.msra.mxu1 %v526_v23 }
  0x69   :  { %503 = vmatpush3.bf16.msra.mxu0 %v533_v57 }
  0x6a   :  { %504 = vmatprep.subr.bf16.mxu0 %v665_v0  ;;  %v435_v0 = vld [vmem:[%s808_s6] ss:$0 sm:$0xff] }
  0x6d   :  { %505 = vmatpush3.bf16.msra.mxu0 %v534_v58 }
 0x122   :  { %v130_v10 = vpop.f32.mrb[0].mxu0 }
 0x123   :  { %v131_v11 = vadd.f32 %v130_v10, %v87_v9  ;;  %v468_v12 = vpop.f32.mrb[1].mxu0 }
 0x124   :  { %v133_v13 = vpop.f32.mrb[2].mxu0 }
 0x125   :  { %136 = vadd.xlane.f32.xlu0 %v131_v11  ;;  %v469_v14 = vpop.f32.mrb[3].mxu0  ;;  %v138_v15 = vmul.f32 %v131_v11, %v131_v11 }
 0x129   :  { %139 = vadd.xlane.f32.xlu0 %v138_v15 }
 0x1b2   :  { %v137_v24 = vpop.xlane.xlu0 %136 }
 0x1b3   :  { %v141_v25 = vmul.f32 0.03125, %v137_v24 }
 0x1b5   :  { %v143_v27 = vmul.f32 %v141_v25, %v141_v25  ;;  %v146_v35 = vsub.f32 %v131_v11, %v141_v25 }
 0x1b6   :  { %v140_v26 = vpop.xlane.xlu0 %139 }
 0x1b7   :  { %v142_v28 = vmul.f32 0.03125, %v140_v26 }
 0x1b9   :  { %v144_v29 = vsub.f32 %v142_v28, %v143_v27 }
 0x1bb   :  { %v145_v30 = vmax.f32 %v144_v29, 0.0 }
 0x1bd   :  { %v147_v31 = vadd.f32 1e-05, %v145_v30 }
 0x1bf   :  { %535 = vrsqrt.f32 %v147_v31 }
 0x1c9   :  { %v536_v36 = vpop.eup %535 }
 0x1ca   :  { %v149_v37 = vmul.f32 %v536_v36, %v146_v35 }
 0x1cc   :  { %v154_v39 = vmul.f32 %v153_v34, %v149_v37 }
 0x1ce   :  { %v159_v40 = vadd.f32 %v158_v38, %v154_v39 }
 0x1d0   :  { %v160_v41 = vmax.f32 %v159_v40, 0.0 }
 0x1d2   :  { %v161_v42 = vpack.c.bf16 %v160_v41, %v160_v41 }
 0x1d4   :  { %487 = vmatmul.mubr.bf16.vlgmr.msra.gmra.mrb[0].mxu1 %v161_v42 }
 0x2a7   :  { %v264_v45 = vpop.f32.mrb[0].mxu1 }
 0x2a8   :  { %v265_v46 = vadd.f32 %v264_v45, %v181_v44  ;;  %v488_v47 = vpop.f32.mrb[1].mxu1 }
 0x2a9   :  { %v267_v48 = vpop.f32.mrb[2].mxu1 }
 0x2aa   :  { %270 = vadd.xlane.f32.xlu1 %v265_v46  ;;  %v489_v49 = vpop.f32.mrb[3].mxu1  ;;  %v272_v50 = vmul.f32 %v265_v46, %v265_v46 }
 0x2ae   :  { %273 = vadd.xlane.f32.xlu1 %v272_v50 }
 0x337   :  { %v271_v59 = vpop.xlane.xlu1 %270 }
 0x338   :  { %v275_v60 = vmul.f32 0.03125, %v271_v59 }
 0x33a   :  { %v277_v62 = vmul.f32 %v275_v60, %v275_v60  ;;  %v280_v5 = vsub.f32 %v265_v46, %v275_v60 }
 0x33b   :  { %v274_v61 = vpop.xlane.xlu1 %273 }
 0x33c   :  { %v276_v63 = vmul.f32 0.03125, %v274_v61 }
 0x33e   :  { %v278_v1 = vsub.f32 %v276_v63, %v277_v62 }
 0x340   :  { %v279_v2 = vmax.f32 %v278_v1, 0.0 }
 0x342   :  { %v281_v3 = vadd.f32 1e-05, %v279_v2 }
 0x344   :  { %537 = vrsqrt.f32 %v281_v3 }
 0x34e   :  { %v538_v6 = vpop.eup %537 }
 0x34f   :  { %v283_v8 = vmul.f32 %v538_v6, %v280_v5 }
 0x351   :  { %v288_v9 = vmul.f32 %v287_v4, %v283_v8 }
 0x353   :  { %v293_v10 = vadd.f32 %v292_v7, %v288_v9 }
 0x355   :  { %v294_v11 = vmax.f32 %v293_v10, 0.0 }
 0x357   :  { %v295_v12 = vpack.c.bf16 %v294_v11, %v294_v11 }
 0x359   :  { %507 = vmatmul.mubr.bf16.vlgmr.msra.gmra.mrb[4].mxu0 %v295_v12 }
 0x42c   :  { %v401_v13 = vpop.f32.mrb[4].mxu0 }
 0x42d   :  { %v402_v14 = vadd.f32 %v435_v0, %v401_v13  ;;  %v508_v15 = vpop.f32.mrb[5].mxu0 }
 0x42e   :  { %v404_v16 = vpop.f32.mrb[6].mxu0 }
 0x42f   :  { %539 = vtanh.f32 %v402_v14  ;;  %v509_v17 = vpop.f32.mrb[7].mxu0 }
 0x439   :  { %v540_v18 = vpop.eup %539 }
 0x43a   :  { %408 = vst [vmem:[#allocation10] sm:$0xff] %v540_v18 }
 0x43b   :  { %640 = shalt.err (!%p637_p8)
}
 0x43c   :  { %s641_s9 = scalar_lea.hbm %s809_s7, 128 }
 0x43d   :  { %p642_p9 = scmp.ne.s32.totalorder %s809_s7, %s641_s9  ;;  %p645_p10 = scmp.lt.u32.totalorder %s641_s9, %s809_s7 }
 0x43f   :  { %p647_p11 = pnand %p645_p10, %p642_p9 }
 0x441   :  { %650 = shalt.err (!%p647_p11)
}
 0x442   :  { %418 = dma.vmem_to_hbm [thread:$0]  %s416_s29, 128, %s809_s7, [#allocation4]  }
 0x443   :  { %657 = dma.done.wait [#allocation4], 128  }
 0x444   :  { %658 = vsyncadd [#allocation4], 4294967168 }
 0x445   :  { %422 = vsyncpa [#allocation3], 1 }
 0x446   :  { %423 = vsyncpa [#allocation6], 1 }
 0x447   :  { %424 = vsyncpa [#allocation9], 1 }
 0x448   :  { %425 = vsyncpa [#allocation4], 1 }

</bundles_post_ra>
